<compile_context>
chip_gen: v7x
topology: tpu7x:2x2x1
jax: 0.10.0
libtpu: 0.0.40
codegen_flags: <defaults>
</compile_context>

<pallas_src>
import functools

import jax
import jax.numpy as jnp
from jax.experimental import pallas as pl
from jax.experimental.pallas import tpu as pltpu


# Row indices inside the packed (8, H*W) boundary-mask constant.
_COL_MASK_ROW = {-2: 0, -1: 1, 1: 2, 2: 3}   # masks for source column w + dw
_ROW_MASK_ROW = {-2: 4, -1: 5, 1: 6, 2: 7}   # masks for source row    h + dh


def _silu(v):
    # SiLU = v * sigmoid(v).  The reciprocal goes to the EUP slot (approx
    # vrcp) alongside exp, so the whole activation stays off the VALU.
    return v * pl.reciprocal(1.0 + jnp.exp(-v), approx=True)


# ----------------------------------------------------------------------------
# Fused GhostConv kernel for one (image, channel-tile) block:
#   cv1 (1x1 + bias + SiLU), cv2 (5x5 depthwise + bias + SiLU), channel concat.
# ----------------------------------------------------------------------------
def _ghost_fused_kernel(x_ref, m_ref, w1_ref, b1_ref, w2_ref, b2_ref, o_ref,
                        *, W):
    _, C1, HW = x_ref.shape            # x block: (1, C1, H*W)  (full image)
    TC = w1_ref.shape[0]               # channel-tile size (slice of c_)

    # ---- cv1: 1x1 conv (BN scale pre-folded into w1) + bias + SiLU ----------
    if C1 >= 8:
        # MXU path: (TC, C1) @ (C1, HW), fp32 accumulation.
        y = jnp.dot(w1_ref[...], x_ref[0], preferred_element_type=jnp.float32)
    else:
        # Degenerate thin contraction: rank-1 VPU broadcast-FMAs (MXU skipped).
        xf = x_ref[0].astype(jnp.float32)
        w1 = w1_ref[...].astype(jnp.float32)
        y = w1[:, 0:1] * xf[0:1, :]
        for ci in range(1, C1):
            y = y + w1[:, ci:ci + 1] * xf[ci:ci + 1, :]
    y = _silu(y + b1_ref[...].astype(jnp.float32))            # (TC, HW) fp32

    # ---- cv2: 5x5 depthwise conv on y (stride 1, pad 2) + bias + SiLU -------
    # Shifted taps via lane rolls of the flattened H*W axis; image boundaries
    # are zeroed with the precomputed (8, HW) masks (implicit zero padding).
    masks = m_ref[...]                                         # (8, HW) f32
    w2 = w2_ref[...].astype(jnp.float32)                       # (TC, 32)

    # Column (dw) taps are shared by all 5 filter rows: 4 rolls, not 25 shifts.
    taps = []
    for j in range(5):
        dw = j - 2
        if dw == 0:
            taps.append(y)
        else:
            cm = masks[_COL_MASK_ROW[dw]:_COL_MASK_ROW[dw] + 1, :]
            taps.append(pltpu.roll(y, (-dw) % HW, axis=1) * cm)

    def row_sum(i):                    # sum_j y[.., w+j-2] * w2[i, j]
        s = taps[0] * w2[:, 5 * i:5 * i + 1]
        for j in range(1, 5):
            s = s + taps[j] * w2[:, 5 * i + j:5 * i + j + 1]
        return s

    acc = row_sum(2)                   # dh = 0: no roll, no mask -> acc init
    for i in (0, 1, 3, 4):
        dh = i - 2
        rm = masks[_ROW_MASK_ROW[dh]:_ROW_MASK_ROW[dh] + 1, :]
        acc = acc + pltpu.roll(row_sum(i), (-dh * W) % HW, axis=1) * rm
    z = _silu(acc + b2_ref[...].astype(jnp.float32))

    # ---- concat([y, y2], channel axis) -------------------------------------
    # Output block is (1, 2, TC, HW): the two ghost halves of this channel
    # tile are full, sublane-aligned sub-blocks (unmasked stores for TC % 8 == 0).
    o_ref[0, 0] = y.astype(o_ref.dtype)
    o_ref[0, 1] = z.astype(o_ref.dtype)


def _ghost_conv_flat(x_flat, masks, w1, b1, w2, b2, *, W, tc):
    """x_flat: (N, C1, H*W) -> (N, 2, c_, H*W), flattened NCHW layout."""
    N, C1, HW = x_flat.shape
    CH = b1.shape[0]
    assert CH % tc == 0
    CT = CH // tc

    kernel = functools.partial(_ghost_fused_kernel, W=W)
    return pl.pallas_call(
        kernel,
        out_shape=jax.ShapeDtypeStruct((N, 2, CH, HW), x_flat.dtype),
        grid=(N, CT),                                   # image x channel-tile
        in_specs=[
            # Full image per n; index constant over c -> fetched once per n.
            pl.BlockSpec((1, C1, HW), lambda n, c: (n, 0, 0)),
            # Precomputed boundary masks: constant block.
            pl.BlockSpec((8, HW), lambda n, c: (0, 0)),
            # Channel-tiled, BN-folded weights / biases.
            pl.BlockSpec((tc, C1), lambda n, c: (c, 0)),    # w1 (MXU-ready)
            pl.BlockSpec((tc, 1), lambda n, c: (c, 0)),     # b1
            pl.BlockSpec((tc, 32), lambda n, c: (c, 0)),    # w2 (25 taps, lane-packed)
            pl.BlockSpec((tc, 1), lambda n, c: (c, 0)),     # b2
        ],
        out_specs=pl.BlockSpec((1, 2, tc, HW), lambda n, c: (n, 0, c, 0)),
        compiler_params=pltpu.CompilerParams(
            # Every step writes its own disjoint output block -> fully
            # independent; lets the v7x megacore split the N x CT grid.
            # (Single-TC v5e/v6e: harmless no-op.)
            dimension_semantics=("parallel", "parallel"),
            # Explicit scoped-VMEM budget: double the v5e default (16 MiB),
            # still well under v7x's 64 MiB physical.  Per-step working set
            # here (x slab + (tc, HW) tiles) is far below this.
            vmem_limit_bytes=32 * 1024 * 1024,
        ),
    )(x_flat, masks, w1, b1, w2, b2)


def _make_boundary_masks(H, W, dtype=jnp.float32):
    """(8, H*W) masks: rows 0..3 column-validity for dw=-2,-1,+1,+2,
    rows 4..7 row-validity for dh=-2,-1,+1,+2 (implicit zero padding)."""
    pos = jnp.arange(H * W)
    wi = pos % W
    hi = pos // W
    rows = []
    for dw in (-2, -1, 1, 2):
        rows.append((wi >= -dw) if dw < 0 else (wi < W - dw))
    for dh in (-2, -1, 1, 2):
        rows.append((hi >= -dh) if dh < 0 else (hi < H - dh))
    return jnp.stack(rows).astype(dtype)


def _pick_channel_tile(CH, HW):
    """Channel-tile size: multiple of 8 (sublane-aligned fp32 stores), grown
    while the per-tile fp32 working set (~y + 5 taps + acc + out) stays small,
    so steps amortize the ~0.35us grid-step overhead."""
    if CH % 8 != 0:
        return CH                      # tiny / odd channel counts (toy shapes)
    tc = 8
    while tc * 2 <= CH and CH % (tc * 2) == 0 and 8 * (tc * 2) * HW * 4 <= 4 * 2**20:
        tc *= 2
    return tc


# ----------------------------------------------------------------------------
# Parameters (synthetic, deterministic) with BatchNorm (eval) pre-folded.
# ----------------------------------------------------------------------------
def make_ghost_params(key, c1, c2, dtype=jnp.float32):
    """PyTorch layouts: cv1.conv.weight (c_, c1, 1, 1), cv2.conv.weight
    (c_, 1, 5, 5).  The per-output-channel BN scale gamma/sqrt(var+eps) is
    folded into the conv weights; the kernel only adds a bias and applies
    SiLU.  Packed layouts: w1 (c_, c1) MXU-ready; w2 (c_, 32) with tap
    kh*5+kw at lane kh*5+kw (lanes 25..31 zero); biases (c_, 1)."""
    c_ = c2 // 2
    k1, k2 = jax.random.split(key, 2)
    w1 = jax.random.normal(k1, (c_, c1), jnp.float32) * 0.1
    w2 = jax.random.normal(k2, (c_, 5, 5), jnp.float32) * 0.1

    eps = 1e-5

    def bn_affine(c, base):
        gamma = 1.0 + 0.05 * jnp.arange(c, dtype=jnp.float32) + base
        beta = 0.01 * jnp.arange(c, dtype=jnp.float32) - base
        mean = 0.02 * jnp.arange(c, dtype=jnp.float32)
        var = 1.0 + 0.1 * jnp.arange(c, dtype=jnp.float32)
        scale = gamma / jnp.sqrt(var + eps)
        bias = beta - mean * scale
        return scale, bias

    s1, b1 = bn_affine(c_, 0.0)
    s2, b2 = bn_affine(c_, 0.1)

    w1_f = w1 * s1[:, None]                                   # fold BN into cv1
    w2_f = (w2 * s2[:, None, None]).reshape(c_, 25)           # fold BN into cv2
    w2_packed = jnp.pad(w2_f, ((0, 0), (0, 7)))               # (c_, 32)

    return dict(
        w1=w1_f.astype(dtype),                                # (c_, c1)
        b1=b1[:, None].astype(dtype),                         # (c_, 1)
        w2=w2_packed.astype(dtype),                           # (c_, 32)
        b2=b2[:, None].astype(dtype),                         # (c_, 1)
    )


@jax.jit
def ghost_conv(x_nchw, params):
    """GhostConv forward. x_nchw: (N, C1, H, W) -> (N, C2, H, W), NCHW kept.
    Supports fp32 or bf16 I/O (fp32 accumulation inside the kernel)."""
    N, C1, H, W = x_nchw.shape
    CH = params["b1"].shape[0]
    HW = H * W
    # Merging / splitting contiguous trailing dims is a free reshape: puts
    # H*W on the lane axis without any NCHW<->NHWC transpose pass.
    x_flat = x_nchw.reshape(N, C1, HW)
    masks = _make_boundary_masks(H, W)                        # constant-folded
    tc = _pick_channel_tile(CH, HW)
    out = _ghost_conv_flat(x_flat, masks, params["w1"], params["b1"],
                           params["w2"], params["b2"], W=W, tc=tc)
    return out.reshape(N, 2 * CH, H, W)


def ghost_conv_reference(x_nchw, params):
    """Pure-JAX mirror of the PyTorch GhostConv forward (verification only)."""
    w1 = params["w1"].astype(jnp.float32)                     # (c_, c1)
    b1 = params["b1"][:, 0].astype(jnp.float32)
    w2 = params["w2"][:, :25].astype(jnp.float32).reshape(-1, 5, 5)
    b2 = params["b2"][:, 0].astype(jnp.float32)
    H, W = x_nchw.shape[2], x_nchw.shape[3]

    y = jnp.einsum("nchw,oc->nohw", x_nchw.astype(jnp.float32), w1,
                   precision=jax.lax.Precision.HIGHEST)
    y = y + b1[None, :, None, None]
    y = y * jax.nn.sigmoid(y)

    yp = jnp.pad(y, ((0, 0), (0, 0), (2, 2), (2, 2)))
    acc = jnp.zeros_like(y)
    for kh in range(5):
        for kw in range(5):
            acc = acc + (yp[:, :, kh:kh + H, kw:kw + W]
                         * w2[:, kh, kw][None, :, None, None])
    y2 = acc + b2[None, :, None, None]
    y2 = y2 * jax.nn.sigmoid(y2)
    return jnp.concatenate([y, y2], axis=1).astype(x_nchw.dtype)


if __name__ == "__main__":
    key = jax.random.PRNGKey(0)
    kx, kp, kx2, kp2 = jax.random.split(key, 4)

    # Case 1: small spec shape (fp32; exercises the C1 < 8 VPU cv1 path).
    N, C1, H, W = 2, 4, 16, 16
    C2 = 8                                    # c_ = 4
    x = jax.random.normal(kx, (N, C1, H, W), jnp.float32)
    params = make_ghost_params(kp, C1, C2, dtype=jnp.float32)
    out = ghost_conv(x, params)
    jax.block_until_ready(out)
    assert out.shape == (N, C2, H, W), out.shape
    ref = ghost_conv_reference(x, params)
    # Loose tolerance only because SiLU uses the EUP approx reciprocal.
    assert jnp.allclose(out, ref, atol=5e-2, rtol=5e-2), (
        float(jnp.max(jnp.abs(out - ref))))

    # Case 2: wider channels in bf16 (exercises MXU cv1, channel tiling,
    # bf16 I/O with fp32 accumulation).
    N2, C12, H2, W2 = 1, 16, 16, 16
    C22 = 32                                  # c_ = 16
    x2 = jax.random.normal(kx2, (N2, C12, H2, W2), jnp.float32).astype(jnp.bfloat16)
    params2 = make_ghost_params(kp2, C12, C22, dtype=jnp.bfloat16)
    out2 = ghost_conv(x2, params2)
    jax.block_until_ready(out2)
    assert out2.shape == (N2, C22, H2, W2), out2.shape
    ref2 = ghost_conv_reference(x2, params2)
    assert jnp.allclose(out2.astype(jnp.float32), ref2.astype(jnp.float32),
                        atol=1e-1, rtol=1e-1), (
        float(jnp.max(jnp.abs(out2.astype(jnp.float32) - ref2.astype(jnp.float32)))))

    print("KERNEL_OK")
</pallas_src>

<mosaic_0001>
module attributes {stable_mosaic.version = 11 : i64} {
  func.func @_ghost_fused_kernel(%arg0: i32, %arg1: i32, %arg2: memref<1x4x256xf32, #tpu.memory_space<vmem>>, %arg3: memref<8x256xf32, #tpu.memory_space<vmem>>, %arg4: memref<4x4xf32, #tpu.memory_space<vmem>>, %arg5: memref<4x1xf32, #tpu.memory_space<vmem>>, %arg6: memref<4x32xf32, #tpu.memory_space<vmem>>, %arg7: memref<4x1xf32, #tpu.memory_space<vmem>>, %arg8: memref<1x2x4x256xf32, #tpu.memory_space<vmem>>) attributes {dimension_semantics = [#tpu.dimension_semantics<parallel>, #tpu.dimension_semantics<parallel>], iteration_bounds = array<i64: 2, 1>, scalar_prefetch = 0 : i64, scratch_operands = 0 : i64, tpu.core_type = #tpu.core_type<tc>, window_params = [{transform_indices = @transform_0, window_bounds = array<i64: 1, 4, 256>}, {pipeline_mode = #tpu.pipeline_mode<synchronous>, transform_indices = @transform_1, window_bounds = array<i64: 8, 256>}, {transform_indices = @transform_2, window_bounds = array<i64: 4, 4>}, {transform_indices = @transform_3, window_bounds = array<i64: 4, 1>}, {transform_indices = @transform_4, window_bounds = array<i64: 4, 32>}, {transform_indices = @transform_5, window_bounds = array<i64: 4, 1>}, {transform_indices = @transform_6, window_bounds = array<i64: 1, 2, 4, 256>}]} {
    %c0 = arith.constant 0 : index
    %c0_0 = arith.constant 0 : index
    %c0_1 = arith.constant 0 : index
    %0 = vector.load %arg2[%c0, %c0_0, %c0_1] : memref<1x4x256xf32, #tpu.memory_space<vmem>>, vector<1x4x256xf32>
    %1 = vector.shape_cast %0 : vector<1x4x256xf32> to vector<4x256xf32>
    %c0_2 = arith.constant 0 : index
    %c0_3 = arith.constant 0 : index
    %2 = vector.load %arg4[%c0_2, %c0_3] : memref<4x4xf32, #tpu.memory_space<vmem>>, vector<4x4xf32>
    %3 = vector.extract_strided_slice %2 {offsets = [0, 0], sizes = [4, 1], strides = [1, 1]} : vector<4x4xf32> to vector<4x1xf32>
    %4 = vector.extract_strided_slice %1 {offsets = [0, 0], sizes = [1, 256], strides = [1, 1]} : vector<4x256xf32> to vector<1x256xf32>
    %5 = vector.broadcast %3 : vector<4x1xf32> to vector<4x256xf32>
    %6 = vector.broadcast %4 : vector<1x256xf32> to vector<4x256xf32>
    %7 = arith.mulf %5, %6 : vector<4x256xf32>
    %8 = vector.extract_strided_slice %2 {offsets = [0, 1], sizes = [4, 1], strides = [1, 1]} : vector<4x4xf32> to vector<4x1xf32>
    %9 = vector.extract_strided_slice %1 {offsets = [1, 0], sizes = [1, 256], strides = [1, 1]} : vector<4x256xf32> to vector<1x256xf32>
    %10 = vector.broadcast %8 : vector<4x1xf32> to vector<4x256xf32>
    %11 = vector.broadcast %9 : vector<1x256xf32> to vector<4x256xf32>
    %12 = arith.mulf %10, %11 : vector<4x256xf32>
    %13 = arith.addf %7, %12 : vector<4x256xf32>
    %14 = vector.extract_strided_slice %2 {offsets = [0, 2], sizes = [4, 1], strides = [1, 1]} : vector<4x4xf32> to vector<4x1xf32>
    %15 = vector.extract_strided_slice %1 {offsets = [2, 0], sizes = [1, 256], strides = [1, 1]} : vector<4x256xf32> to vector<1x256xf32>
    %16 = vector.broadcast %14 : vector<4x1xf32> to vector<4x256xf32>
    %17 = vector.broadcast %15 : vector<1x256xf32> to vector<4x256xf32>
    %18 = arith.mulf %16, %17 : vector<4x256xf32>
    %19 = arith.addf %13, %18 : vector<4x256xf32>
    %20 = vector.extract_strided_slice %2 {offsets = [0, 3], sizes = [4, 1], strides = [1, 1]} : vector<4x4xf32> to vector<4x1xf32>
    %21 = vector.extract_strided_slice %1 {offsets = [3, 0], sizes = [1, 256], strides = [1, 1]} : vector<4x256xf32> to vector<1x256xf32>
    %22 = vector.broadcast %20 : vector<4x1xf32> to vector<4x256xf32>
    %23 = vector.broadcast %21 : vector<1x256xf32> to vector<4x256xf32>
    %24 = arith.mulf %22, %23 : vector<4x256xf32>
    %25 = arith.addf %19, %24 : vector<4x256xf32>
    %c0_4 = arith.constant 0 : index
    %c0_5 = arith.constant 0 : index
    %26 = vector.load %arg5[%c0_4, %c0_5] : memref<4x1xf32, #tpu.memory_space<vmem>>, vector<4x1xf32>
    %27 = vector.broadcast %26 : vector<4x1xf32> to vector<4x256xf32>
    %28 = arith.addf %25, %27 : vector<4x256xf32>
    %cst = arith.constant 0.000000e+00 : f32
    %29 = vector.broadcast %cst : f32 to vector<4x256xf32>
    %30 = arith.subf %29, %28 : vector<4x256xf32>
    %31 = math.exp %30 : vector<4x256xf32>
    %cst_6 = arith.constant 1.000000e+00 : f32
    %32 = vector.broadcast %cst_6 : f32 to vector<4x256xf32>
    %33 = arith.addf %32, %31 : vector<4x256xf32>
    %34 = tpu.reciprocal %33 {approx = true} : vector<4x256xf32> -> vector<4x256xf32>
    %35 = arith.mulf %28, %34 : vector<4x256xf32>
    %c0_7 = arith.constant 0 : index
    %c0_8 = arith.constant 0 : index
    %36 = vector.load %arg3[%c0_7, %c0_8] : memref<8x256xf32, #tpu.memory_space<vmem>>, vector<8x256xf32>
    %c0_9 = arith.constant 0 : index
    %c0_10 = arith.constant 0 : index
    %37 = vector.load %arg6[%c0_9, %c0_10] : memref<4x32xf32, #tpu.memory_space<vmem>>, vector<4x32xf32>
    %38 = vector.extract_strided_slice %36 {offsets = [0, 0], sizes = [1, 256], strides = [1, 1]} : vector<8x256xf32> to vector<1x256xf32>
    %c2_i32 = arith.constant 2 : i32
    %39 = tpu.dynamic_rotate %35 by %c2_i32 dim 1 : vector<4x256xf32>, i32 -> vector<4x256xf32>
    %40 = vector.broadcast %38 : vector<1x256xf32> to vector<4x256xf32>
    %41 = arith.mulf %39, %40 : vector<4x256xf32>
    %42 = vector.extract_strided_slice %36 {offsets = [1, 0], sizes = [1, 256], strides = [1, 1]} : vector<8x256xf32> to vector<1x256xf32>
    %c1_i32 = arith.constant 1 : i32
    %43 = tpu.dynamic_rotate %35 by %c1_i32 dim 1 : vector<4x256xf32>, i32 -> vector<4x256xf32>
    %44 = vector.broadcast %42 : vector<1x256xf32> to vector<4x256xf32>
    %45 = arith.mulf %43, %44 : vector<4x256xf32>
    %46 = vector.extract_strided_slice %36 {offsets = [2, 0], sizes = [1, 256], strides = [1, 1]} : vector<8x256xf32> to vector<1x256xf32>
    %c255_i32 = arith.constant 255 : i32
    %47 = tpu.dynamic_rotate %35 by %c255_i32 dim 1 : vector<4x256xf32>, i32 -> vector<4x256xf32>
    %48 = vector.broadcast %46 : vector<1x256xf32> to vector<4x256xf32>
    %49 = arith.mulf %47, %48 : vector<4x256xf32>
    %50 = vector.extract_strided_slice %36 {offsets = [3, 0], sizes = [1, 256], strides = [1, 1]} : vector<8x256xf32> to vector<1x256xf32>
    %c254_i32 = arith.constant 254 : i32
    %51 = tpu.dynamic_rotate %35 by %c254_i32 dim 1 : vector<4x256xf32>, i32 -> vector<4x256xf32>
    %52 = vector.broadcast %50 : vector<1x256xf32> to vector<4x256xf32>
    %53 = arith.mulf %51, %52 : vector<4x256xf32>
    %54 = vector.extract_strided_slice %37 {offsets = [0, 10], sizes = [4, 1], strides = [1, 1]} : vector<4x32xf32> to vector<4x1xf32>
    %55 = vector.broadcast %54 : vector<4x1xf32> to vector<4x256xf32>
    %56 = arith.mulf %41, %55 : vector<4x256xf32>
    %57 = vector.extract_strided_slice %37 {offsets = [0, 11], sizes = [4, 1], strides = [1, 1]} : vector<4x32xf32> to vector<4x1xf32>
    %58 = vector.broadcast %57 : vector<4x1xf32> to vector<4x256xf32>
    %59 = arith.mulf %45, %58 : vector<4x256xf32>
    %60 = arith.addf %56, %59 : vector<4x256xf32>
    %61 = vector.extract_strided_slice %37 {offsets = [0, 12], sizes = [4, 1], strides = [1, 1]} : vector<4x32xf32> to vector<4x1xf32>
    %62 = vector.broadcast %61 : vector<4x1xf32> to vector<4x256xf32>
    %63 = arith.mulf %35, %62 : vector<4x256xf32>
    %64 = arith.addf %60, %63 : vector<4x256xf32>
    %65 = vector.extract_strided_slice %37 {offsets = [0, 13], sizes = [4, 1], strides = [1, 1]} : vector<4x32xf32> to vector<4x1xf32>
    %66 = vector.broadcast %65 : vector<4x1xf32> to vector<4x256xf32>
    %67 = arith.mulf %49, %66 : vector<4x256xf32>
    %68 = arith.addf %64, %67 : vector<4x256xf32>
    %69 = vector.extract_strided_slice %37 {offsets = [0, 14], sizes = [4, 1], strides = [1, 1]} : vector<4x32xf32> to vector<4x1xf32>
    %70 = vector.broadcast %69 : vector<4x1xf32> to vector<4x256xf32>
    %71 = arith.mulf %53, %70 : vector<4x256xf32>
    %72 = arith.addf %68, %71 : vector<4x256xf32>
    %73 = vector.extract_strided_slice %36 {offsets = [4, 0], sizes = [1, 256], strides = [1, 1]} : vector<8x256xf32> to vector<1x256xf32>
    %74 = vector.extract_strided_slice %37 {offsets = [0, 0], sizes = [4, 1], strides = [1, 1]} : vector<4x32xf32> to vector<4x1xf32>
    %75 = vector.broadcast %74 : vector<4x1xf32> to vector<4x256xf32>
    %76 = arith.mulf %41, %75 : vector<4x256xf32>
    %77 = vector.extract_strided_slice %37 {offsets = [0, 1], sizes = [4, 1], strides = [1, 1]} : vector<4x32xf32> to vector<4x1xf32>
    %78 = vector.broadcast %77 : vector<4x1xf32> to vector<4x256xf32>
    %79 = arith.mulf %45, %78 : vector<4x256xf32>
    %80 = arith.addf %76, %79 : vector<4x256xf32>
    %81 = vector.extract_strided_slice %37 {offsets = [0, 2], sizes = [4, 1], strides = [1, 1]} : vector<4x32xf32> to vector<4x1xf32>
    %82 = vector.broadcast %81 : vector<4x1xf32> to vector<4x256xf32>
    %83 = arith.mulf %35, %82 : vector<4x256xf32>
    %84 = arith.addf %80, %83 : vector<4x256xf32>
    %85 = vector.extract_strided_slice %37 {offsets = [0, 3], sizes = [4, 1], strides = [1, 1]} : vector<4x32xf32> to vector<4x1xf32>
    %86 = vector.broadcast %85 : vector<4x1xf32> to vector<4x256xf32>
    %87 = arith.mulf %49, %86 : vector<4x256xf32>
    %88 = arith.addf %84, %87 : vector<4x256xf32>
    %89 = vector.extract_strided_slice %37 {offsets = [0, 4], sizes = [4, 1], strides = [1, 1]} : vector<4x32xf32> to vector<4x1xf32>
    %90 = vector.broadcast %89 : vector<4x1xf32> to vector<4x256xf32>
    %91 = arith.mulf %53, %90 : vector<4x256xf32>
    %92 = arith.addf %88, %91 : vector<4x256xf32>
    %c32_i32 = arith.constant 32 : i32
    %93 = tpu.dynamic_rotate %92 by %c32_i32 dim 1 : vector<4x256xf32>, i32 -> vector<4x256xf32>
    %94 = vector.broadcast %73 : vector<1x256xf32> to vector<4x256xf32>
    %95 = arith.mulf %93, %94 : vector<4x256xf32>
    %96 = arith.addf %72, %95 : vector<4x256xf32>
    %97 = vector.extract_strided_slice %36 {offsets = [5, 0], sizes = [1, 256], strides = [1, 1]} : vector<8x256xf32> to vector<1x256xf32>
    %98 = vector.extract_strided_slice %37 {offsets = [0, 5], sizes = [4, 1], strides = [1, 1]} : vector<4x32xf32> to vector<4x1xf32>
    %99 = vector.broadcast %98 : vector<4x1xf32> to vector<4x256xf32>
    %100 = arith.mulf %41, %99 : vector<4x256xf32>
    %101 = vector.extract_strided_slice %37 {offsets = [0, 6], sizes = [4, 1], strides = [1, 1]} : vector<4x32xf32> to vector<4x1xf32>
    %102 = vector.broadcast %101 : vector<4x1xf32> to vector<4x256xf32>
    %103 = arith.mulf %45, %102 : vector<4x256xf32>
    %104 = arith.addf %100, %103 : vector<4x256xf32>
    %105 = vector.extract_strided_slice %37 {offsets = [0, 7], sizes = [4, 1], strides = [1, 1]} : vector<4x32xf32> to vector<4x1xf32>
    %106 = vector.broadcast %105 : vector<4x1xf32> to vector<4x256xf32>
    %107 = arith.mulf %35, %106 : vector<4x256xf32>
    %108 = arith.addf %104, %107 : vector<4x256xf32>
    %109 = vector.extract_strided_slice %37 {offsets = [0, 8], sizes = [4, 1], strides = [1, 1]} : vector<4x32xf32> to vector<4x1xf32>
    %110 = vector.broadcast %109 : vector<4x1xf32> to vector<4x256xf32>
    %111 = arith.mulf %49, %110 : vector<4x256xf32>
    %112 = arith.addf %108, %111 : vector<4x256xf32>
    %113 = vector.extract_strided_slice %37 {offsets = [0, 9], sizes = [4, 1], strides = [1, 1]} : vector<4x32xf32> to vector<4x1xf32>
    %114 = vector.broadcast %113 : vector<4x1xf32> to vector<4x256xf32>
    %115 = arith.mulf %53, %114 : vector<4x256xf32>
    %116 = arith.addf %112, %115 : vector<4x256xf32>
    %c16_i32 = arith.constant 16 : i32
    %117 = tpu.dynamic_rotate %116 by %c16_i32 dim 1 : vector<4x256xf32>, i32 -> vector<4x256xf32>
    %118 = vector.broadcast %97 : vector<1x256xf32> to vector<4x256xf32>
    %119 = arith.mulf %117, %118 : vector<4x256xf32>
    %120 = arith.addf %96, %119 : vector<4x256xf32>
    %121 = vector.extract_strided_slice %36 {offsets = [6, 0], sizes = [1, 256], strides = [1, 1]} : vector<8x256xf32> to vector<1x256xf32>
    %122 = vector.extract_strided_slice %37 {offsets = [0, 15], sizes = [4, 1], strides = [1, 1]} : vector<4x32xf32> to vector<4x1xf32>
    %123 = vector.broadcast %122 : vector<4x1xf32> to vector<4x256xf32>
    %124 = arith.mulf %41, %123 : vector<4x256xf32>
    %125 = vector.extract_strided_slice %37 {offsets = [0, 16], sizes = [4, 1], strides = [1, 1]} : vector<4x32xf32> to vector<4x1xf32>
    %126 = vector.broadcast %125 : vector<4x1xf32> to vector<4x256xf32>
    %127 = arith.mulf %45, %126 : vector<4x256xf32>
    %128 = arith.addf %124, %127 : vector<4x256xf32>
    %129 = vector.extract_strided_slice %37 {offsets = [0, 17], sizes = [4, 1], strides = [1, 1]} : vector<4x32xf32> to vector<4x1xf32>
    %130 = vector.broadcast %129 : vector<4x1xf32> to vector<4x256xf32>
    %131 = arith.mulf %35, %130 : vector<4x256xf32>
    %132 = arith.addf %128, %131 : vector<4x256xf32>
    %133 = vector.extract_strided_slice %37 {offsets = [0, 18], sizes = [4, 1], strides = [1, 1]} : vector<4x32xf32> to vector<4x1xf32>
    %134 = vector.broadcast %133 : vector<4x1xf32> to vector<4x256xf32>
    %135 = arith.mulf %49, %134 : vector<4x256xf32>
    %136 = arith.addf %132, %135 : vector<4x256xf32>
    %137 = vector.extract_strided_slice %37 {offsets = [0, 19], sizes = [4, 1], strides = [1, 1]} : vector<4x32xf32> to vector<4x1xf32>
    %138 = vector.broadcast %137 : vector<4x1xf32> to vector<4x256xf32>
    %139 = arith.mulf %53, %138 : vector<4x256xf32>
    %140 = arith.addf %136, %139 : vector<4x256xf32>
    %c240_i32 = arith.constant 240 : i32
    %141 = tpu.dynamic_rotate %140 by %c240_i32 dim 1 : vector<4x256xf32>, i32 -> vector<4x256xf32>
    %142 = vector.broadcast %121 : vector<1x256xf32> to vector<4x256xf32>
    %143 = arith.mulf %141, %142 : vector<4x256xf32>
    %144 = arith.addf %120, %143 : vector<4x256xf32>
    %145 = vector.extract_strided_slice %36 {offsets = [7, 0], sizes = [1, 256], strides = [1, 1]} : vector<8x256xf32> to vector<1x256xf32>
    %146 = vector.extract_strided_slice %37 {offsets = [0, 20], sizes = [4, 1], strides = [1, 1]} : vector<4x32xf32> to vector<4x1xf32>
    %147 = vector.broadcast %146 : vector<4x1xf32> to vector<4x256xf32>
    %148 = arith.mulf %41, %147 : vector<4x256xf32>
    %149 = vector.extract_strided_slice %37 {offsets = [0, 21], sizes = [4, 1], strides = [1, 1]} : vector<4x32xf32> to vector<4x1xf32>
    %150 = vector.broadcast %149 : vector<4x1xf32> to vector<4x256xf32>
    %151 = arith.mulf %45, %150 : vector<4x256xf32>
    %152 = arith.addf %148, %151 : vector<4x256xf32>
    %153 = vector.extract_strided_slice %37 {offsets = [0, 22], sizes = [4, 1], strides = [1, 1]} : vector<4x32xf32> to vector<4x1xf32>
    %154 = vector.broadcast %153 : vector<4x1xf32> to vector<4x256xf32>
    %155 = arith.mulf %35, %154 : vector<4x256xf32>
    %156 = arith.addf %152, %155 : vector<4x256xf32>
    %157 = vector.extract_strided_slice %37 {offsets = [0, 23], sizes = [4, 1], strides = [1, 1]} : vector<4x32xf32> to vector<4x1xf32>
    %158 = vector.broadcast %157 : vector<4x1xf32> to vector<4x256xf32>
    %159 = arith.mulf %49, %158 : vector<4x256xf32>
    %160 = arith.addf %156, %159 : vector<4x256xf32>
    %161 = vector.extract_strided_slice %37 {offsets = [0, 24], sizes = [4, 1], strides = [1, 1]} : vector<4x32xf32> to vector<4x1xf32>
    %162 = vector.broadcast %161 : vector<4x1xf32> to vector<4x256xf32>
    %163 = arith.mulf %53, %162 : vector<4x256xf32>
    %164 = arith.addf %160, %163 : vector<4x256xf32>
    %c224_i32 = arith.constant 224 : i32
    %165 = tpu.dynamic_rotate %164 by %c224_i32 dim 1 : vector<4x256xf32>, i32 -> vector<4x256xf32>
    %166 = vector.broadcast %145 : vector<1x256xf32> to vector<4x256xf32>
    %167 = arith.mulf %165, %166 : vector<4x256xf32>
    %168 = arith.addf %144, %167 : vector<4x256xf32>
    %c0_11 = arith.constant 0 : index
    %c0_12 = arith.constant 0 : index
    %169 = vector.load %arg7[%c0_11, %c0_12] : memref<4x1xf32, #tpu.memory_space<vmem>>, vector<4x1xf32>
    %170 = vector.broadcast %169 : vector<4x1xf32> to vector<4x256xf32>
    %171 = arith.addf %168, %170 : vector<4x256xf32>
    %cst_13 = arith.constant 0.000000e+00 : f32
    %172 = vector.broadcast %cst_13 : f32 to vector<4x256xf32>
    %173 = arith.subf %172, %171 : vector<4x256xf32>
    %174 = math.exp %173 : vector<4x256xf32>
    %cst_14 = arith.constant 1.000000e+00 : f32
    %175 = vector.broadcast %cst_14 : f32 to vector<4x256xf32>
    %176 = arith.addf %175, %174 : vector<4x256xf32>
    %177 = tpu.reciprocal %176 {approx = true} : vector<4x256xf32> -> vector<4x256xf32>
    %178 = arith.mulf %171, %177 : vector<4x256xf32>
    %c0_15 = arith.constant 0 : index
    %c0_16 = arith.constant 0 : index
    %c0_17 = arith.constant 0 : index
    %c0_18 = arith.constant 0 : index
    %179 = vector.load %arg8[%c0_15, %c0_16, %c0_17, %c0_18] : memref<1x2x4x256xf32, #tpu.memory_space<vmem>>, vector<1x1x4x256xf32>
    %180 = vector.shape_cast %179 : vector<1x1x4x256xf32> to vector<4x256xf32>
    %181 = vector.shape_cast %35 : vector<4x256xf32> to vector<1x1x4x256xf32>
    tpu.vector_store %arg8[%c0_15, %c0_16, %c0_17, %c0_18], %181 {strides = array<i32>} : memref<1x2x4x256xf32, #tpu.memory_space<vmem>>, vector<1x1x4x256xf32>,
    %c0_19 = arith.constant 0 : index
    %c1 = arith.constant 1 : index
    %c0_20 = arith.constant 0 : index
    %c0_21 = arith.constant 0 : index
    %182 = vector.load %arg8[%c0_19, %c1, %c0_20, %c0_21] : memref<1x2x4x256xf32, #tpu.memory_space<vmem>>, vector<1x1x4x256xf32>
    %183 = vector.shape_cast %182 : vector<1x1x4x256xf32> to vector<4x256xf32>
    %184 = vector.shape_cast %178 : vector<4x256xf32> to vector<1x1x4x256xf32>
    tpu.vector_store %arg8[%c0_19, %c1, %c0_20, %c0_21], %184 {strides = array<i32>} : memref<1x2x4x256xf32, #tpu.memory_space<vmem>>, vector<1x1x4x256xf32>,
    return
  }
  func.func @transform_0(%arg0: i32, %arg1: i32) -> (i32, i32, i32) {
    %c0_i32 = arith.constant 0 : i32
    %c0_i32_0 = arith.constant 0 : i32
    %c0_i32_1 = arith.constant 0 : i32
    return %arg0, %c0_i32, %c0_i32_0 : i32, i32, i32
  }
  func.func @transform_1(%arg0: i32, %arg1: i32) -> (i32, i32) {
    %c0_i32 = arith.constant 0 : i32
    %c0_i32_0 = arith.constant 0 : i32
    %c0_i32_1 = arith.constant 0 : i32
    return %c0_i32, %c0_i32_0 : i32, i32
  }
  func.func @transform_2(%arg0: i32, %arg1: i32) -> (i32, i32) {
    %c0_i32 = arith.constant 0 : i32
    %c0_i32_0 = arith.constant 0 : i32
    return %arg1, %c0_i32 : i32, i32
  }
  func.func @transform_3(%arg0: i32, %arg1: i32) -> (i32, i32) {
    %c0_i32 = arith.constant 0 : i32
    %c0_i32_0 = arith.constant 0 : i32
    return %arg1, %c0_i32 : i32, i32
  }
  func.func @transform_4(%arg0: i32, %arg1: i32) -> (i32, i32) {
    %c0_i32 = arith.constant 0 : i32
    %c0_i32_0 = arith.constant 0 : i32
    return %arg1, %c0_i32 : i32, i32
  }
  func.func @transform_5(%arg0: i32, %arg1: i32) -> (i32, i32) {
    %c0_i32 = arith.constant 0 : i32
    %c0_i32_0 = arith.constant 0 : i32
    return %arg1, %c0_i32 : i32, i32
  }
  func.func @transform_6(%arg0: i32, %arg1: i32) -> (i32, i32, i32, i32) {
    %c0_i32 = arith.constant 0 : i32
    %c0_i32_0 = arith.constant 0 : i32
    %c0_i32_1 = arith.constant 0 : i32
    return %arg0, %c0_i32, %arg1, %c0_i32_0 : i32, i32, i32, i32
  }
}

</mosaic_0001>

<bundles_post_ra>
// kernel: ghost_conv.1
= control target key start
LH: loop header
LB: loop body
LE: loop exit
PB: predicated region body
PF: predicated region fallthrough
CT: control target
= control target key end

     0   :  { %s1197_s21 = smov 0   ;;  %s1199_s22 = smov 0   ;;  %s1515_s0 = inlined_call_operand.vmem [shape: f32[2,4,256], index: 0, kind: input, shape index: {}]   ;;  %s1516_s1 = inlined_call_operand.vmem [shape: f32[8,256], index: 1, kind: input, shape index: {}]   ;;  %s1517_s2 = inlined_call_operand.vmem [shape: f32[4,4], index: 2, kind: input, shape index: {}]   ;;  %s1518_s3 = inlined_call_operand.vmem [shape: f32[4,1], index: 3, kind: input, shape index: {}]   ;;  %s1519_s4 = inlined_call_operand.vmem [shape: f32[4,32], index: 4, kind: input, shape index: {}]   ;;  %s1520_s5 = inlined_call_operand.vmem [shape: f32[4,1], index: 5, kind: input, shape index: {}]   ;;  %s1521_s6 = inlined_call_operand.vmem [shape: f32[2,2,4,256], index: 6, kind: output, shape index: {}]  }
   0x1   :  { %s1201_s23 = smov 0  }
   0x2 LB: > { %s28_s24 = sadd.s32 1, %s1123_s22  ;;  %p991_p0 = scmp.ge.s32.totalorder %s1127_s23, 1  ;;  %s1127_s23 = sphi %s1201_s23, %s16_s23   ;;  %s1123_s22 = sphi %s1199_s22, %s1523_s22   ;;  %s1119_s21 = sphi %s1197_s21, %s1522_s21  }
   0x3   : > { %p30_p1 = scmp.ge.s32.totalorder %s28_s24, 2  ;;  %p262_p2 = scmp.lt.s32.totalorder %s1127_s23, 3 }
   0x5   : > { %s1525_s24 = smov (%p30_p1, %s28_s24), 0  ;;  %p263_p3 = pnand %p991_p0, %p262_p2 }
   0x6   : > { %v343_v0 = vld [vmem:[%s1517_s2] sm:$0xf] (!%p263_p3)  ;;  %v1129_v1 = vmov (!%p263_p3), 2   ;;  %v1130_v2 = vmov (!%p263_p3), 0   ;;  %v1131_v3 = vmov (!%p263_p3), 3   ;;  %v1132_v4 = vmov (!%p263_p3), 1  }
   0x7   : > { %266 = sbr.rel (%p263_p3) target bundleno = 492 (0x1ec), region = 44  ;;  %1060 = vset.pattern.permute.xlu1 (!%p263_p3), %v1129_v1  ;;  %1058 = vset.pattern.permute.xlu0 (!%p263_p3), %v1130_v2  ;;  %v448_v5 = vld [vmem:[%s1518_s3] sm:$0xf] (!%p263_p3)  ;;  %v1133_v7 = vmov (!%p263_p3), 5   ;;  %v1134_v8 = vmov (!%p263_p3), 7   ;;  %v1135_v9 = vmov (!%p263_p3), 6   ;;  %v350_v23 = vlaneseq (!%p263_p3) }
   0x8   : > { %397 = vperm.xlu1 (!%p263_p3), %1060, %v343_v0   ;;  %346 = vperm.xlu0 (!%p263_p3), %1058, %v343_v0   ;;  %v1228_v6 = vld [vmem:[%s1519_s4] sm:$0xf] (!%p263_p3)  ;;  %v1136_v10 = vmov (!%p263_p3), 4   ;;  %v1137_v11 = vmov (!%p263_p3), 20   ;;  %v1138_v12 = vmov (!%p263_p3), 15   ;;  %v1139_v13 = vmov (!%p263_p3), 18  }
   0x9   : > { %v1140_v14 = vmov (!%p263_p3), 16   ;;  %v1141_v15 = vmov (!%p263_p3), 8   ;;  %v1142_v16 = vmov (!%p263_p3), 17   ;;  %v1143_v17 = vmov (!%p263_p3), 21   ;;  %p312_p4 = scmp.lt.s32.totalorder (!%p263_p3), %s1119_s21, 1  ;;  %s1149_s12 = smov (!%p263_p3), 2  }
   0xa   : > { %v1144_v18 = vmov (!%p263_p3), 9   ;;  %v1145_v19 = vmov (!%p263_p3), 23   ;;  %v1146_v20 = vmov (!%p263_p3), 22   ;;  %v1147_v21 = vmov (!%p263_p3), 19   ;;  %s1150_s16 = smov (!%p263_p3), 1   ;;  %s1151_s17 = smov (!%p263_p3), 127  }
   0xb   : > { %v1148_v22 = vmov (!%p263_p3), 24   ;;  %v351_v24 = vshrl.u32 (!%p263_p3), %v350_v23, 7  ;;  %s1152_s18 = smov (!%p263_p3), 126   ;;  %s1158_s26 = smov (!%p263_p3), 16  }
   0xc   : > { %1061 = vset.pattern.permute.xlu1 (!%p263_p3), %v1131_v3  ;;  %1059 = vset.pattern.permute.xlu0 (!%p263_p3), %v1132_v4  ;;  %s1159_s27 = smov (!%p263_p3), 32   ;;  %s1160_s28 = smov (!%p263_p3), 112  }
   0xd   : > { %423 = vperm.xlu1 (!%p263_p3), %1061, %v343_v0   ;;  %371 = vperm.xlu0 (!%p263_p3), %1059, %v343_v0   ;;  %v1258_v25 = vsub.s32 (!%p263_p3), 0, %v351_v24  ;;  %v1260_v26 = vsub.s32 (!%p263_p3), 4, %v351_v24  ;;  %v1262_v27 = vsub.s32 (!%p263_p3), 1, %v351_v24  ;;  %v1264_v28 = vsub.s32 (!%p263_p3), 5, %v351_v24 }
   0xe   : > { %s1527_s21 = smov (!%p312_p4, %s1119_s21), 1  ;;  %v1266_v30 = vsub.s32 2, %v351_v24  ;;  %v1268_v31 = vsub.s32 6, %v351_v24  ;;  %v1270_v32 = vsub.s32 3, %v351_v24  ;;  %v1272_v33 = vsub.s32 7, %v351_v24 }
   0xf   : > { %s999_s7 = sshll.u32 %s1527_s21, 3  ;;  %s1000_s11 = sshll.u32 %s1527_s21, 4  ;;  %v1154_v24 = vmov 11  }
  0x10   : > { %s316_s10 = scalar_lea.vmem %s1515_s0, %s999_s7  ;;  %s1299_s15 = scalar_lea.vmem %s1521_s6, %s1000_s11 }
  0x11   : > { %1062 = vset.pattern.permute.xlu1 %v1130_v2  ;;  %1063 = vset.pattern.permute.xlu0 %v1130_v2  ;;  %v342_v29 = vld [vmem:[%s316_s10] sm:$0xff]  ;;  %s1161_s7 = smov 96  }
  0x12   : > { %451 = vperm.xlu1 %1062, %v448_v5   ;;  %581 = vperm.xlu0 %1063, %v1228_v6   ;;  %v353_v34 = vrot.slane %v342_v29, %v1258_v25  ;;  %v357_v35 = vrot.slane %v342_v29, %v1260_v26  ;;  %v377_v36 = vrot.slane %v342_v29, %v1262_v27 }
  0x13   : > { %v381_v37 = vrot.slane %v342_v29, %v1264_v28  ;;  %v403_v38 = vrot.slane %v342_v29, %v1266_v30  ;;  %v407_v39 = vrot.slane %v342_v29, %v1268_v31  ;;  %v429_v42 = vrot.slane %v342_v29, %v1270_v32 }
  0x14   : > { %v433_v43 = vrot.slane %v342_v29, %v1272_v33  ;;  %v363_v44 = vrot.slane %v353_v34, %v1258_v25  ;;  %v367_v45 = vrot.slane %v357_v35, %v1258_v25  ;;  %v387_v46 = vrot.slane %v377_v36, %v1262_v27 }
  0x15   : > { %v391_v47 = vrot.slane %v381_v37, %v1262_v27  ;;  %v413_v48 = vrot.slane %v403_v38, %v1266_v30  ;;  %v417_v49 = vrot.slane %v407_v39, %v1266_v30  ;;  %v439_v50 = vrot.slane %v429_v42, %v1270_v32 }
  0x16   : > { %1064 = vset.pattern.permute.xlu1 %v1132_v4  ;;  %1066 = vset.pattern.permute.xlu0 %v1133_v7  ;;  %v443_v51 = vrot.slane %v433_v43, %v1270_v32  ;;  %v1155_v29 = vmov 12   ;;  %v1156_v34 = vmov 14   ;;  %v1157_v35 = vmov 13  }
  0x17   : > { %587 = vperm.xlu1 %1064, %v1228_v6   ;;  %638 = vperm.xlu0 %1066, %v1228_v6  }
  0x1b   : > { %1065 = vset.pattern.permute.xlu1 %v1129_v1  ;;  %1069 = vset.pattern.permute.xlu0 %v1134_v8 }
  0x1c   : > { %595 = vperm.xlu1 %1065, %v1228_v6   ;;  %652 = vperm.xlu0 %1069, %v1228_v6  }
  0x20   : > { %1067 = vset.pattern.permute.xlu1 %v1135_v9  ;;  %1072 = vset.pattern.permute.xlu0 %v1136_v10 }
  0x21   : > { %644 = vperm.xlu1 %1067, %v1228_v6   ;;  %611 = vperm.xlu0 %1072, %v1228_v6  }
  0x25   : > { %1068 = vset.pattern.permute.xlu1 %v1131_v3  ;;  %1075 = vset.pattern.permute.xlu0 %v1137_v11 }
  0x26   : > { %603 = vperm.xlu1 %1068, %v1228_v6   ;;  %752 = vperm.xlu0 %1075, %v1228_v6  }
  0x2a   : > { %1070 = vset.pattern.permute.xlu1 %v1138_v12  ;;  %1078 = vset.pattern.permute.xlu0 %v1139_v13 }
  0x2b   : > { %695 = vperm.xlu1 %1070, %v1228_v6   ;;  %717 = vperm.xlu0 %1078, %v1228_v6  }
  0x2f   : > { %1071 = vset.pattern.permute.xlu1 %v1140_v14  ;;  %1081 = vset.pattern.permute.xlu0 %v1145_v19 }
  0x30   : > { %701 = vperm.xlu1 %1071, %v1228_v6  }
  0x34   : > { %1073 = vset.pattern.permute.xlu1 %v1141_v15 }
  0x35   : > { %660 = vperm.xlu1 %1073, %v1228_v6  }
  0x39   : > { %1074 = vset.pattern.permute.xlu1 %v1142_v16 }
  0x3a   : > { %709 = vperm.xlu1 %1074, %v1228_v6  }
  0x3e   : > { %1076 = vset.pattern.permute.xlu1 %v1143_v17 }
  0x3f   : > { %758 = vperm.xlu1 %1076, %v1228_v6  }
  0x43   : > { %1077 = vset.pattern.permute.xlu1 %v1144_v18 }
  0x44   : > { %668 = vperm.xlu1 %1077, %v1228_v6  }
  0x48   : > { %1079 = vset.pattern.permute.xlu1 %v1146_v20 }
  0x49   : > { %766 = vperm.xlu1 %1079, %v1228_v6  }
  0x4d   : > { %1080 = vset.pattern.permute.xlu1 %v1147_v21 }
  0x4e   : > { %725 = vperm.xlu1 %1080, %v1228_v6  }
  0x52   : > { %1082 = vset.pattern.permute.xlu1 %v1148_v22  ;;  %v1153_v22 = vmov 10  }
  0x87   : > { %v347_v40 = vpop.permute.xlu0 %346  ;;  %v398_v41 = vpop.permute.xlu1 %397 }
  0x88   : > { %v368_v54 = vmul.f32 %v363_v44, %v347_v40  ;;  %v369_v55 = vmul.f32 %v367_v45, %v347_v40  ;;  %v418_v58 = vmul.f32 %v413_v48, %v398_v41  ;;  %v419_v59 = vmul.f32 %v417_v49, %v398_v41 }
  0x8c   : > { %v372_v52 = vpop.permute.xlu0 %371  ;;  %v424_v53 = vpop.permute.xlu1 %423 }
  0x8d   : > { %v392_v56 = vmul.f32 %v387_v46, %v372_v52  ;;  %v393_v57 = vmul.f32 %v391_v47, %v372_v52  ;;  %v444_v62 = vmul.f32 %v439_v50, %v424_v53  ;;  %v445_v63 = vmul.f32 %v443_v51, %v424_v53  ;;  %v1353_v53 = vld [vmem:[%s1516_s1] sm:$0xff] }
  0x8e   : > { %v1348_v52 = vand.u32 127, %v350_v23 }
  0x8f   : > { %v394_v60 = vadd.f32 %v392_v56, %v368_v54  ;;  %v395_v61 = vadd.f32 %v393_v57, %v369_v55  ;;  %v1358_v54 = vld [vmem:[%s1516_s1 + $0x8] sm:$0xff]  ;;  %v483_v55 = vrot.slane %v1353_v53, %v1258_v25 }
  0x90   : > { %vm477_vm0 = vcmp.lt.s32.totalorder %v1348_v52, 2  ;;  %v487_v23 = vrot.slane %v1358_v54, %v1258_v25  ;;  %vm494_vm1 = vcmp.lt.s32.totalorder %v1348_v52, 1  ;;  %vm511_vm2 = vcmp.lt.s32.totalorder %v1348_v52, 127 }
  0x91   : > { %v420_v0 = vadd.f32 %v418_v58, %v394_v60  ;;  %v421_v1 = vadd.f32 %v419_v59, %v395_v61  ;;  %v452_v3 = vpop.permute.xlu1 %451  ;;  %v582_v42 = vpop.permute.xlu0 %581  ;;  %v500_v60 = vrot.slane %v1353_v53, %v1262_v27  ;;  %v504_v61 = vrot.slane %v1358_v54, %v1262_v27 }
  0x92   : > { %v521_v25 = vrot.slane %v1358_v54, %v1266_v30  ;;  %vm528_vm3 = vcmp.lt.s32.totalorder %v1348_v52, 126  ;;  %vm622_vm4 = vcmp.lt.s32.totalorder %v1348_v52, 32  ;;  %vm679_vm5 = vcmp.lt.s32.totalorder %v1348_v52, 16 }
  0x93   : > { %v446_v4 = vadd.f32 %v444_v62, %v420_v0  ;;  %v447_v5 = vadd.f32 %v445_v63, %v421_v1  ;;  %v517_v1 = vrot.slane %v1353_v53, %v1266_v30  ;;  %vm736_vm6 = vcmp.lt.s32.totalorder %v1348_v52, 112 }
  0x94   : > { %vm793_vm7 = vcmp.lt.s32.totalorder %v1348_v52, 96 }
  0x95   : > { %v454_v7 = vadd.f32 %v452_v3, %v446_v4  ;;  %v455_v8 = vadd.f32 %v452_v3, %v447_v5 }
  0x96   : > { %v588_v36 = vpop.permute.xlu1 %587  ;;  %v639_v44 = vpop.permute.xlu0 %638 }
  0x97   : > { %v456_v9 = vsub.f32 0.0, %v454_v7  ;;  %v457_v10 = vsub.f32 0.0, %v455_v8 }
  0x99   : > { %v458_v11 = vmul.f32 1.442695, %v456_v9  ;;  %v460_v12 = vmul.f32 1.442695, %v457_v10  ;;  %v538_v9 = vrot.slane %v1358_v54, %v1270_v32 }
  0x9b   : > { %1089 = vpow2.f32 %v458_v11  ;;  %v1319_v37 = vpop.permute.xlu1 %595 }
  0x9c   : > { %1091 = vpow2.f32 %v460_v12 }
  0xa0   : > { %v645_v38 = vpop.permute.xlu1 %644 }
  0xa5   : > { %v1090_v13 = vpop.eup %1089  ;;  %v1321_v39 = vpop.permute.xlu1 %603 }
  0xa6   : > { %v1092_v14 = vpop.eup %1091  ;;  %v462_v15 = vadd.f32 1.0, %v1090_v13 }
  0xa7   : > { %v463_v16 = vadd.f32 1.0, %v1092_v14 }
  0xa8   : > { %1093 = vrcp.f32 %v462_v15 }
  0xa9   : > { %1095 = vrcp.f32 %v463_v16 }
  0xaa   : > { %v1323_v40 = vpop.permute.xlu1 %695 }
  0xaf   : > { %v1325_v41 = vpop.permute.xlu1 %701 }
  0xb2   : > { %v1094_v17 = vpop.eup %1093 }
  0xb3   : > { %v1096_v18 = vpop.eup %1095  ;;  %v1291_v19 = vmul.f32 %v1094_v17, %v454_v7 }
  0xb4   : > { %v1293_v20 = vmul.f32 %v1096_v18, %v455_v8  ;;  %v1327_v43 = vpop.permute.xlu1 %660  ;;  %v534_v8 = vrot.slane %v1353_v53, %v1270_v32 }
  0xb5   : > { %471 = vrot.lane.b32.xlu1 %v1291_v19, %s1149_s12  ;;  %v598_v10 = vmul.f32 %v1319_v37, %v1291_v19 }
  0xb6   : > { %473 = vrot.lane.b32.xlu0 %v1293_v20, %s1149_s12  ;;  %v830_v21 = vcombine.low %v1291_v19, %v1293_v20 }
  0xb8   : > { %832 = vst [vmem:[%s1299_s15] sm:$0xff] %v830_v21 }
  0xb9   : > { %490 = vrot.lane.b32.xlu1 %v1291_v19, %s1150_s16  ;;  %v1329_v45 = vpop.permute.xlu1 %709 }
  0xba   : > { %492 = vrot.lane.b32.xlu0 %v1293_v20, %s1150_s16 }
  0xbd   : > { %507 = vrot.lane.b32.xlu1 %v1291_v19, %s1151_s17 }
  0xbe   : > { %509 = vrot.lane.b32.xlu0 %v1293_v20, %s1151_s17  ;;  %v1331_v46 = vpop.permute.xlu1 %758 }
  0xc1   : > { %524 = vrot.lane.b32.xlu1 %v1291_v19, %s1152_s18 }
  0xc2   : > { %526 = vrot.lane.b32.xlu0 %v1293_v20, %s1152_s18 }
  0xc3   : > { %v1337_v47 = vpop.permute.xlu1 %668 }
  0xc5   : > { %782 = vperm.xlu1 %1082, %v1228_v6  }
  0xc6   : > { %774 = vperm.xlu0 %1081, %v1228_v6  }
  0xc8   : > { %v1341_v49 = vpop.permute.xlu1 %766 }
  0xc9   : > { %1083 = vset.pattern.permute.xlu1 %v1153_v22 }
  0xca   : > { %1084 = vset.pattern.permute.xlu0 %v1154_v24  ;;  %543 = vperm.xlu1 %1083, %v1228_v6  }
  0xcb   : > { %549 = vperm.xlu0 %1084, %v1228_v6  }
  0xcd   : > { %v1343_v50 = vpop.permute.xlu1 %725 }
  0xce   : > { %1085 = vset.pattern.permute.xlu1 %v1155_v29 }
  0xcf   : > { %1087 = vset.pattern.permute.xlu0 %v1156_v34  ;;  %557 = vperm.xlu1 %1085, %v1228_v6  }
  0xd0   : > { %573 = vperm.xlu0 %1087, %v1228_v6  }
  0xd3   : > { %1086 = vset.pattern.permute.xlu1 %v1157_v35 }
  0xd4   : > { %565 = vperm.xlu1 %1086, %v1228_v6   ;;  %1088 = vset.pattern.permute.xlu0 %v1130_v2  ;;  %v1333_v6 = vpop.permute.xlu0 %652 }
  0xd5   : > { %v655_v30 = vmul.f32 %v1333_v6, %v1291_v19 }
  0xd8   : > { %v1335_v2 = vpop.permute.xlu0 %611 }
  0xdc   : > { %v1339_v48 = vpop.permute.xlu0 %752 }
  0xe0   : > { %v1345_v51 = vpop.permute.xlu0 %717 }
 0x127   : > { %v472_v56 = vpop.permute.xlu1 %471 }
 0x128   : > { %v474_v57 = vpop.permute.xlu0 %473 }
 0x129   : > { %v479_v58 = vsel %vm477_vm0, %v474_v57, %v472_v56  ;;  %v478_v59 = vsel %vm477_vm0, %v472_v56, %v474_v57 }
 0x12a   : > { %v1370_v62 = vmul.f32 %v483_v55, %v479_v58  ;;  %v1377_v3 = vmul.f32 %v487_v23, %v478_v59 }
 0x12b   : > { %v491_v63 = vpop.permute.xlu1 %490 }
 0x12c   : > { %v493_v0 = vpop.permute.xlu0 %492  ;;  %v641_v12 = vmul.f32 %v639_v44, %v1370_v62  ;;  %v584_v13 = vmul.f32 %v582_v42, %v1370_v62  ;;  %v698_v22 = vmul.f32 %v1323_v40, %v1370_v62  ;;  %v585_v24 = vmul.f32 %v582_v42, %v1377_v3 }
 0x12d   : > { %v495_v4 = vsel %vm494_vm1, %v491_v63, %v493_v0  ;;  %v496_v5 = vsel %vm494_vm1, %v493_v0, %v491_v63  ;;  %v642_v58 = vmul.f32 %v639_v44, %v1377_v3  ;;  %v712_v0 = vmul.f32 %v1329_v45, %v1291_v19 }
 0x12e   : > { %v1380_v7 = vmul.f32 %v500_v60, %v496_v5  ;;  %v1382_v27 = vmul.f32 %v504_v61, %v495_v4  ;;  %v599_v44 = vmul.f32 %v1319_v37, %v1293_v20 }
 0x12f   : > { %v508_v11 = vpop.permute.xlu1 %507 }
 0x130   : > { %v510_v14 = vpop.permute.xlu0 %509  ;;  %v647_v15 = vmul.f32 %v645_v38, %v1380_v7  ;;  %v590_v16 = vmul.f32 %v588_v36, %v1380_v7  ;;  %v704_v17 = vmul.f32 %v1325_v41, %v1380_v7  ;;  %v591_v32 = vmul.f32 %v588_v36, %v1382_v27 }
 0x131   : > { %v512_v18 = vsel %vm511_vm2, %v508_v11, %v510_v14  ;;  %v513_v21 = vsel %vm511_vm2, %v510_v14, %v508_v11  ;;  %v648_v55 = vmul.f32 %v645_v38, %v1382_v27 }
 0x132   : > { %v1406_v29 = vmul.f32 %v517_v1, %v512_v18  ;;  %v649_v34 = vadd.f32 %v647_v15, %v641_v12  ;;  %v592_v35 = vadd.f32 %v590_v16, %v584_v13  ;;  %v1409_v56 = vmul.f32 %v521_v25, %v513_v21 }
 0x133   : > { %v525_v36 = vpop.permute.xlu1 %524  ;;  %v706_v57 = vadd.f32 %v704_v17, %v698_v22  ;;  %v593_v23 = vadd.f32 %v591_v32, %v585_v24  ;;  %v650_v5 = vadd.f32 %v648_v55, %v642_v58  ;;  %v699_v21 = vmul.f32 %v1323_v40, %v1377_v3 }
 0x134   : > { %v527_v59 = vpop.permute.xlu0 %526  ;;  %v657_v60 = vadd.f32 %v655_v30, %v649_v34  ;;  %v663_v61 = vmul.f32 %v1327_v43, %v1406_v29  ;;  %v600_v63 = vadd.f32 %v598_v10, %v592_v35  ;;  %v606_v42 = vmul.f32 %v1321_v39, %v1406_v29 }
 0x135   : > { %v529_v38 = vsel %vm528_vm3, %v525_v36, %v527_v59  ;;  %v530_v1 = vsel %vm528_vm3, %v527_v59, %v525_v36  ;;  %v714_v11 = vadd.f32 %v712_v0, %v706_v57  ;;  %v720_v12 = vmul.f32 %v1345_v51, %v1406_v29 }
 0x136   : > { %v1424_v25 = vmul.f32 %v534_v8, %v529_v38  ;;  %v1426_v4 = vmul.f32 %v538_v9, %v530_v1  ;;  %v665_v10 = vadd.f32 %v663_v61, %v657_v60  ;;  %v608_v30 = vadd.f32 %v606_v42, %v600_v63 }
 0x137   : > { %v601_v15 = vadd.f32 %v599_v44, %v593_v23  ;;  %v607_v37 = vmul.f32 %v1321_v39, %v1409_v56  ;;  %v656_v8 = vmul.f32 %v1333_v6, %v1293_v20  ;;  %v722_v18 = vadd.f32 %v720_v12, %v714_v11 }
 0x138   : > { %v671_v13 = vmul.f32 %v1337_v47, %v1424_v25  ;;  %v614_v14 = vmul.f32 %v1335_v2, %v1424_v25  ;;  %v728_v17 = vmul.f32 %v1343_v50, %v1424_v25  ;;  %v615_v32 = vmul.f32 %v1335_v2, %v1426_v4 }
 0x139   : > { %v705_v22 = vmul.f32 %v1325_v41, %v1382_v27  ;;  %v609_v39 = vadd.f32 %v607_v37, %v601_v15  ;;  %v658_v6 = vadd.f32 %v656_v8, %v650_v5  ;;  %v664_v24 = vmul.f32 %v1327_v43, %v1409_v56 }
 0x13a   : > { %v673_v9 = vadd.f32 %v671_v13, %v665_v10  ;;  %v616_v16 = vadd.f32 %v614_v14, %v608_v30  ;;  %v713_v34 = vmul.f32 %v1329_v45, %v1293_v20  ;;  %v730_v35 = vadd.f32 %v728_v17, %v722_v18 }
 0x13b   : > { %v707_v2 = vadd.f32 %v705_v22, %v699_v21  ;;  %v617_v55 = vadd.f32 %v615_v32, %v609_v39  ;;  %v672_v40 = vmul.f32 %v1337_v47, %v1426_v4  ;;  %v761_v41 = vmul.f32 %v1331_v46, %v1380_v7  ;;  %v808_v47 = vld [vmem:[%s1520_s5] sm:$0xf] }
 0x13c   : > { %675 = vrot.lane.b32.xlu0 %v673_v9, %s1158_s26  ;;  %618 = vrot.lane.b32.xlu1 %v616_v16, %s1159_s27  ;;  %v755_v36 = vmul.f32 %v1339_v48, %v1370_v62  ;;  %v762_v57 = vmul.f32 %v1331_v46, %v1382_v27  ;;  %v666_v43 = vadd.f32 %v664_v24, %v658_v6 }
 0x13d   : > { %v715_v45 = vadd.f32 %v713_v34, %v707_v2  ;;  %v721_v23 = vmul.f32 %v1345_v51, %v1409_v56  ;;  %v756_v59 = vmul.f32 %v1339_v48, %v1377_v3  ;;  %v729_v46 = vmul.f32 %v1343_v50, %v1426_v4 }
 0x13e   : > { %v674_v58 = vadd.f32 %v672_v40, %v666_v43  ;;  %v763_v60 = vadd.f32 %v761_v41, %v755_v36  ;;  %v769_v61 = vmul.f32 %v1341_v49, %v1291_v19  ;;  %v770_v0 = vmul.f32 %v1341_v49, %v1293_v20 }
 0x13f   : > { %v764_v63 = vadd.f32 %v762_v57, %v756_v59  ;;  %v723_v51 = vadd.f32 %v721_v23, %v715_v45  ;;  %v628_v57 = vrot.slane %v1353_v53, %v1260_v26  ;;  %v689_v43 = vrot.slane %v1358_v54, %v1264_v28 }
 0x140   : > { %732 = vrot.lane.b32.xlu0 %v730_v35, %s1160_s28  ;;  %620 = vrot.lane.b32.xlu1 %v617_v55, %s1159_s27  ;;  %v771_v1 = vadd.f32 %v769_v61, %v763_v60 }
 0x141   : > { %v731_v5 = vadd.f32 %v729_v46, %v723_v51  ;;  %v772_v10 = vadd.f32 %v770_v0, %v764_v63  ;;  %v746_v46 = vrot.slane %v1358_v54, %v1268_v31 }
 0x144   : > { %677 = vrot.lane.b32.xlu1 %v674_v58, %s1158_s26  ;;  %v783_v42 = vpop.permute.xlu1 %782  ;;  %811 = vperm.xlu0 %1088, %v808_v47  }
 0x145   : > { %v775_v38 = vpop.permute.xlu0 %774  ;;  %v785_v30 = vmul.f32 %v783_v42, %v1424_v25  ;;  %v786_v9 = vmul.f32 %v783_v42, %v1426_v4 }
 0x146   : > { %v777_v44 = vmul.f32 %v775_v38, %v1406_v29  ;;  %v778_v48 = vmul.f32 %v775_v38, %v1409_v56  ;;  %v803_v38 = vrot.slane %v1358_v54, %v1272_v33 }
 0x148   : > { %v779_v50 = vadd.f32 %v777_v44, %v771_v1  ;;  %734 = vrot.lane.b32.xlu1 %v731_v5, %s1160_s28  ;;  %v780_v12 = vadd.f32 %v778_v48, %v772_v10 }
 0x149   : > { %v544_v11 = vpop.permute.xlu1 %543 }
 0x14a   : > { %v787_v13 = vadd.f32 %v785_v30, %v779_v50  ;;  %v550_v14 = vpop.permute.xlu0 %549  ;;  %v546_v15 = vmul.f32 %v544_v11, %v1370_v62  ;;  %v547_v49 = vmul.f32 %v544_v11, %v1377_v3  ;;  %v788_v32 = vadd.f32 %v786_v9, %v780_v12 }
 0x14b   : > { %v552_v37 = vmul.f32 %v550_v14, %v1380_v7  ;;  %v553_v8 = vmul.f32 %v550_v14, %v1382_v27 }
 0x14c   : > { %789 = vrot.lane.b32.xlu1 %v787_v13, %s1161_s7 }
 0x14d   : > { %v554_v16 = vadd.f32 %v552_v37, %v546_v15  ;;  %v555_v17 = vadd.f32 %v553_v8, %v547_v49 }
 0x14e   : > { %v558_v18 = vpop.permute.xlu1 %557 }
 0x14f   : > { %v560_v21 = vmul.f32 %v558_v18, %v1291_v19  ;;  %v561_v22 = vmul.f32 %v558_v18, %v1293_v20  ;;  %v574_v62 = vpop.permute.xlu0 %573 }
 0x150   : > { %791 = vrot.lane.b32.xlu1 %v788_v32, %s1161_s7  ;;  %v576_v24 = vmul.f32 %v574_v62, %v1424_v25  ;;  %v577_v34 = vmul.f32 %v574_v62, %v1426_v4  ;;  %v685_v4 = vrot.slane %v1353_v53, %v1264_v28  ;;  %v799_v28 = vrot.slane %v1353_v53, %v1272_v33 }
 0x151   : > { %v562_v3 = vadd.f32 %v560_v21, %v554_v16  ;;  %v563_v6 = vadd.f32 %v561_v22, %v555_v17 }
 0x153   : > { %v566_v39 = vpop.permute.xlu1 %565 }
 0x154   : > { %v568_v7 = vmul.f32 %v566_v39, %v1406_v29  ;;  %v569_v27 = vmul.f32 %v566_v39, %v1409_v56  ;;  %v632_v29 = vrot.slane %v1358_v54, %v1260_v26  ;;  %v742_v26 = vrot.slane %v1353_v53, %v1268_v31 }
 0x156   : > { %v570_v2 = vadd.f32 %v568_v7, %v562_v3  ;;  %v571_v35 = vadd.f32 %v569_v27, %v563_v6 }
 0x158   : > { %v578_v55 = vadd.f32 %v576_v24, %v570_v2  ;;  %v579_v40 = vadd.f32 %v577_v34, %v571_v35 }
 0x1ae   : > { %v619_v19 = vpop.permute.xlu1 %618  ;;  %v676_v20 = vpop.permute.xlu0 %675 }
 0x1b2   : > { %v621_v41 = vpop.permute.xlu1 %620  ;;  %v733_v58 = vpop.permute.xlu0 %732 }
 0x1b3   : > { %v623_v56 = vsel %vm622_vm4, %v619_v19, %v621_v41  ;;  %v624_v25 = vsel %vm622_vm4, %v621_v41, %v619_v19 }
 0x1b4   : > { %v633_v59 = vmul.f32 %v628_v57, %v624_v25  ;;  %v634_v60 = vmul.f32 %v632_v29, %v623_v56 }
 0x1b6   : > { %v678_v36 = vpop.permute.xlu1 %677  ;;  %v635_v1 = vadd.f32 %v633_v59, %v578_v55  ;;  %v636_v44 = vadd.f32 %v634_v60, %v579_v40 }
 0x1b7   : > { %v680_v23 = vsel %vm679_vm5, %v676_v20, %v678_v36  ;;  %v681_v47 = vsel %vm679_vm5, %v678_v36, %v676_v20 }
 0x1b8   : > { %v690_v42 = vmul.f32 %v685_v4, %v681_v47  ;;  %v691_v51 = vmul.f32 %v689_v43, %v680_v23 }
 0x1ba   : > { %v735_v45 = vpop.permute.xlu1 %734  ;;  %v692_v10 = vadd.f32 %v690_v42, %v635_v1  ;;  %v693_v50 = vadd.f32 %v691_v51, %v636_v44 }
 0x1bb   : > { %v737_v61 = vsel %vm736_vm6, %v733_v58, %v735_v45  ;;  %v738_v63 = vsel %vm736_vm6, %v735_v45, %v733_v58 }
 0x1bc   : > { %v747_v48 = vmul.f32 %v742_v26, %v737_v61  ;;  %v748_v5 = vmul.f32 %v746_v46, %v738_v63 }
 0x1be   : > { %v790_v0 = vpop.permute.xlu1 %789  ;;  %v749_v14 = vadd.f32 %v747_v48, %v692_v10  ;;  %v750_v15 = vadd.f32 %v748_v5, %v693_v50 }
 0x1c2   : > { %v792_v31 = vpop.permute.xlu1 %791 }
 0x1c3   : > { %v794_v30 = vsel %vm793_vm7, %v790_v0, %v792_v31  ;;  %v795_v11 = vsel %vm793_vm7, %v792_v31, %v790_v0  ;;  %v812_v52 = vpop.permute.xlu0 %811 }
 0x1c4   : > { %v804_v12 = vmul.f32 %v799_v28, %v794_v30  ;;  %v805_v13 = vmul.f32 %v803_v38, %v795_v11 }
 0x1c6   : > { %v806_v49 = vadd.f32 %v804_v12, %v749_v14  ;;  %v807_v37 = vadd.f32 %v805_v13, %v750_v15 }
 0x1c8   : > { %v814_v53 = vadd.f32 %v812_v52, %v806_v49  ;;  %v815_v8 = vadd.f32 %v812_v52, %v807_v37 }
 0x1ca   : > { %v816_v9 = vsub.f32 0.0, %v814_v53  ;;  %v817_v33 = vsub.f32 0.0, %v815_v8 }
 0x1cc   : > { %v818_v54 = vmul.f32 1.442695, %v816_v9  ;;  %v820_v16 = vmul.f32 1.442695, %v817_v33 }
 0x1ce   : > { %1097 = vpow2.f32 %v818_v54 }
 0x1cf   : > { %1099 = vpow2.f32 %v820_v16 }
 0x1d8   : > { %v1098_v17 = vpop.eup %1097 }
 0x1d9   : > { %v1100_v32 = vpop.eup %1099  ;;  %v822_v18 = vadd.f32 1.0, %v1098_v17 }
 0x1da   : > { %v823_v21 = vadd.f32 1.0, %v1100_v32 }
 0x1db   : > { %1101 = vrcp.f32 %v822_v18 }
 0x1dc   : > { %1103 = vrcp.f32 %v823_v21 }
 0x1e5   : > { %v1102_v22 = vpop.eup %1101 }
 0x1e6   : > { %v1104_v62 = vpop.eup %1103  ;;  %v826_v39 = vmul.f32 %v1102_v22, %v814_v53 }
 0x1e7   : > { %v827_v3 = vmul.f32 %v1104_v62, %v815_v8 }
 0x1e9   : > { %v835_v6 = vcombine.low %v826_v39, %v827_v3 }
 0x1eb   : > { %996 = vst [vmem:[%s1299_s15 + $0x8] sm:$0xff] %v835_v6 }
 0x1ec PF: > { %s16_s23 = sadd.s32 1, %s1127_s23   ;;  %s1522_s21 = smov %s1123_s22 }
 0x1ed   : > { %p13_p5 = scmp.ge.s32.totalorder %s16_s23, 4   ;;  %s1523_s22 = smov %s1525_s24 }
 0x1ef   :  { %15 = sbr.rel (!%p13_p5) target bundleno = 2 (0x2), region = 87 }

</bundles_post_ra>
